<compile_context>
chip_gen: v6e
topology: v6e:2x2x1
jax: 0.10.0
libtpu: 0.0.40
codegen_flags: <defaults>
</compile_context>

<pallas_src>
import jax
import jax.numpy as jnp
from jax.experimental import pallas as pl
from jax.experimental.pallas import tpu as pltpu


def _model1_output_kernel(pt_ref, x_ref, o_ref):
    # pt_ref: (TCo, C)  block of P^T (batch-invariant, resident when n_c == 1)
    # x_ref : (C, THW)  lane-dense tile of one batch element (batch dim squeezed)
    # o_ref : (TCo, THW) matching output tile
    o_ref[...] = jnp.dot(
        pt_ref[...], x_ref[...], preferred_element_type=jnp.float32
    ).astype(o_ref.dtype)


def _vmem_budget_bytes():
    """Per-generation VMEM request budget (leave headroom for Mosaic scratch)."""
    cap = 128 << 20
    try:
        info = pltpu.get_tpu_info()
        cap = getattr(info, "vmem_capacity_bytes", None) or cap
    except Exception:
        pass
    if cap <= (64 << 20):
        return 40 << 20   # v7x: 64 MiB per TensorCore
    return 96 << 20       # v5e / v6e: 128 MiB physical VMEM


def _pick_tiles(C, HW, budget_bytes, itemsize):
    """Pick (TCo, THW) so the double-buffered footprint
         2 * itemsize * (C*THW + TCo*THW + TCo*C) + slack
       fits budget_bytes.  THW (DMA size / HBM roofline) is maximized first;
       C is row-tiled only when even a minimal lane tile would not fit."""
    slack = 2 << 20
    usable = budget_bytes - slack

    def fits(tco, thw):
        return 2 * itemsize * (C * thw + tco * thw + tco * C) <= usable

    min_thw = min(HW, 128)

    # 1) Output-row tile: full C if possible, else shrink to a multiple of 8
    #    (keeps the (8,128) layout rule for the pT / out blocks).
    tco = C
    if not fits(tco, min_thw):
        num = usable - 2 * itemsize * C * min_thw
        den = 2 * itemsize * (min_thw + C)
        tco = max(8, (num // den) // 8 * 8) if num > 0 else 8
        tco = min(tco, C)

    # 2) Lane tile: largest multiple of 128 that fits the budget, soft-capped
    #    at 8192 lanes; use the full HW extent when it is within that limit.
    num = usable - 2 * itemsize * tco * C
    den = 2 * itemsize * (C + tco)
    max_thw = (num // den) // 128 * 128 if num > 0 else 128
    max_thw = max(128, min(max_thw, 8192))

    if HW <= max_thw:
        thw = HW  # full spatial extent (full-dim rule, any HW allowed)
    elif HW % 128 == 0:
        # Prefer a dividing tile (no masked tail) unless it is much smaller
        # than what the budget allows; never fall back to a 128-wide tile.
        best = None
        t = max_thw
        while t >= 128:
            if HW % t == 0:
                best = t
                break
            t -= 128
        thw = best if (best is not None and best >= max(128, max_thw // 2)) else max_thw
    else:
        # Ragged HW: 128-aligned tile, masked tail block (columns independent).
        thw = max_thw

    return tco, thw


def model1_output_forward(weight, G, X):
    """
    weight: (1, C, C) float32
    G:      (1, C, C) float32
    X:      (B, C, H, W) float32
    returns (B, C, H, W) float32  == bmm((W@G)^T, X.view(B,C,-1)).view_as(X)
    """
    B, C, H, W = X.shape
    HW = H * W
    x_flat = X.reshape(B, C, HW)

    # Hoisted, batch-invariant: P^T = (weight @ G)^T.  Tiny (C,C) op in XLA.
    pT = jnp.matmul(weight[0], G[0]).T

    itemsize = jnp.dtype(X.dtype).itemsize
    budget = _vmem_budget_bytes()
    tco, thw = _pick_tiles(C, HW, budget, itemsize)
    n_c = pl.cdiv(C, tco)
    n_hw = pl.cdiv(HW, thw)

    # Real double-buffered footprint; never request less than this.
    footprint = 2 * itemsize * (C * thw + tco * thw + tco * C) + (2 << 20)
    vmem_bytes = int(max(8 << 20, footprint))

    cost = pl.CostEstimate(
        flops=2 * B * C * C * HW,
        bytes_accessed=itemsize * (2 * B * C * HW + B * n_hw * C * C),
        transcendentals=0,
    )

    out_flat = pl.pallas_call(
        _model1_output_kernel,
        out_shape=jax.ShapeDtypeStruct((B, C, HW), X.dtype),
        grid_spec=pltpu.PrefetchScalarGridSpec(
            num_scalar_prefetch=0,
            # c innermost: X tile's block index is constant across c, so it is
            # not re-DMA'd; only the small (TCo, C) pT block cycles.
            grid=(B, n_hw, n_c),
            in_specs=[
                pl.BlockSpec((tco, C), lambda b, h, c: (c, 0)),                 # P^T block
                pl.BlockSpec((pl.Squeezed(), C, thw), lambda b, h, c: (b, 0, h)),  # X tile
            ],
            out_specs=pl.BlockSpec(
                (pl.Squeezed(), tco, thw), lambda b, h, c: (b, c, h)
            ),
        ),
        compiler_params=pltpu.CompilerParams(
            dimension_semantics=("parallel", "parallel", "parallel"),
            vmem_limit_bytes=vmem_bytes,
        ),
        cost_estimate=cost,
    )(pT, x_flat)

    return out_flat.reshape(B, C, H, W)


if __name__ == "__main__":
    # Small, deterministic example shapes consistent with the module.
    B, C, H, W = 2, 4, 16, 16

    key = jax.random.PRNGKey(0)
    k_w, k_g, k_x = jax.random.split(key, 3)

    # nn.Parameter(torch.Tensor(1, C, C)) is uninitialized in the module;
    # initialize deterministically here (synthetic weights, not a checkpoint).
    weight = jax.random.normal(k_w, (1, C, C), dtype=jnp.float32)
    G = jax.random.normal(k_g, (1, C, C), dtype=jnp.float32)  # set via set_gram in torch
    X = jax.random.normal(k_x, (B, C, H, W), dtype=jnp.float32)

    out = model1_output_forward(weight, G, X)
    out = jax.block_until_ready(out)

    # Pure-JAX reference of the same semantics.
    P = jnp.matmul(weight[0], G[0])                                   # (C, C)
    ref = jnp.einsum("cd,bce->bde", P, X.reshape(B, C, -1)).reshape(B, C, H, W)
    assert out.shape == (B, C, H, W)
    assert jnp.allclose(out, ref, atol=1e-5, rtol=1e-5)

    print("KERNEL_OK")
</pallas_src>

<mosaic_0001>
module attributes {stable_mosaic.version = 11 : i64} {
  func.func @_model1_output_kernel(%arg0: i32, %arg1: i32, %arg2: i32, %arg3: memref<4x4xf32, #tpu.memory_space<vmem>>, %arg4: memref<1x4x256xf32, #tpu.memory_space<vmem>>, %arg5: memref<1x4x256xf32, #tpu.memory_space<vmem>>) attributes {dimension_semantics = [#tpu.dimension_semantics<parallel>, #tpu.dimension_semantics<parallel>, #tpu.dimension_semantics<parallel>], iteration_bounds = array<i64: 2, 1, 1>, scalar_prefetch = 0 : i64, scratch_operands = 0 : i64, tpu.core_type = #tpu.core_type<tc>, window_params = [{transform_indices = @transform_0, window_bounds = array<i64: 4, 4>}, {transform_indices = @transform_1, window_bounds = array<i64: 1, 4, 256>}, {transform_indices = @transform_2, window_bounds = array<i64: 1, 4, 256>}]} {
    %c0 = arith.constant 0 : index
    %c0_0 = arith.constant 0 : index
    %0 = vector.load %arg3[%c0, %c0_0] : memref<4x4xf32, #tpu.memory_space<vmem>>, vector<4x4xf32>
    %c0_1 = arith.constant 0 : index
    %c0_2 = arith.constant 0 : index
    %c0_3 = arith.constant 0 : index
    %1 = vector.load %arg4[%c0_1, %c0_2, %c0_3] : memref<1x4x256xf32, #tpu.memory_space<vmem>>, vector<1x4x256xf32>
    %2 = vector.shape_cast %1 : vector<1x4x256xf32> to vector<4x256xf32>
    %cst = arith.constant dense<0.000000e+00> : vector<4x256xf32>
    %3 = tpu.matmul %0, %2, %cst {dimension_numbers = #tpu.dot_dimension_numbers<[1], [0], [0], [1], [0, 0, 1, 1], [], []>} : vector<4x4xf32>, vector<4x256xf32>, vector<4x256xf32> -> vector<4x256xf32>
    %c0_4 = arith.constant 0 : index
    %c0_5 = arith.constant 0 : index
    %c0_6 = arith.constant 0 : index
    %4 = vector.load %arg5[%c0_4, %c0_5, %c0_6] : memref<1x4x256xf32, #tpu.memory_space<vmem>>, vector<1x4x256xf32>
    %5 = vector.shape_cast %4 : vector<1x4x256xf32> to vector<4x256xf32>
    %6 = vector.shape_cast %3 : vector<4x256xf32> to vector<1x4x256xf32>
    tpu.vector_store %arg5[%c0_4, %c0_5, %c0_6], %6 {strides = array<i32>} : memref<1x4x256xf32, #tpu.memory_space<vmem>>, vector<1x4x256xf32>,
    return
  }
  func.func @transform_0(%arg0: i32, %arg1: i32, %arg2: i32) -> (i32, i32) {
    %c0_i32 = arith.constant 0 : i32
    %c0_i32_0 = arith.constant 0 : i32
    return %arg2, %c0_i32 : i32, i32
  }
  func.func @transform_1(%arg0: i32, %arg1: i32, %arg2: i32) -> (i32, i32, i32) {
    %c0_i32 = arith.constant 0 : i32
    %c0_i32_0 = arith.constant 0 : i32
    return %arg0, %c0_i32, %arg1 : i32, i32, i32
  }
  func.func @transform_2(%arg0: i32, %arg1: i32, %arg2: i32) -> (i32, i32, i32) {
    %c0_i32 = arith.constant 0 : i32
    return %arg0, %arg2, %arg1 : i32, i32, i32
  }
}

</mosaic_0001>

<bundles_post_ra>
// kernel: tpu_custom_call.1
= control target key start
LH: loop header
LB: loop body
LE: loop exit
PB: predicated region body
PF: predicated region fallthrough
CT: control target
= control target key end

     0   :  { %7 = vsyncpa [#allocation3], 0  ;;  %s837_s0 = inlined_call_operand.hbm [shape: f32[4,4], index: 0, kind: input, shape index: {}]   ;;  %s838_s1 = inlined_call_operand.hbm [shape: f32[2,4,256], index: 1, kind: input, shape index: {}]   ;;  %s839_s2 = inlined_call_operand.hbm [shape: f32[2,4,256], index: 2, kind: output, shape index: {}]  }
   0x1   :  { %8 = vsyncpa [#allocation6], 0 }
   0x2   :  { %10 = vsyncpa [#allocation6 + $0x1], 0 }
   0x3   :  { %11 = vsyncpa [#allocation4], 0 }
   0x4   :  { %13 = vsyncpa [#allocation4 + $0x1], 0  ;;  %s676_s9 = smov 0   ;;  %s678_s10 = smov 0  }
   0x5   :  { %s680_s11 = smov 0   ;;  %s682_s12 = smov 0  }
   0x6   :  { %s684_s13 = smov 0   ;;  %s686_s14 = smov 0  }
   0x7 LB: > { %s420_s15 = sadd.s32 4294967295, %s655_s14   ;;  %s421_s16 = sadd.s32 4294967294, %s655_s14   ;;  %s655_s14 = sphi %s686_s14, %s19_s14   ;;  %s651_s13 = sphi %s684_s13, %s856_s13   ;;  %s647_s12 = sphi %s682_s12, %s855_s12   ;;  %s643_s11 = sphi %s680_s11, %s854_s11   ;;  %s639_s10 = sphi %s678_s10, %s853_s10   ;;  %s635_s9 = sphi %s676_s9, %s852_s9  }
   0x8   : > { %p86_p0 = scmp.ne.s32.totalorder %s639_s10, %s635_s9  ;;  %p710_p1 = scmp.eq.s32.totalorder %s420_s15, 0 }
   0x9   : > { %p714_p2 = scmp.eq.s32.totalorder %s420_s15, 1  ;;  %p120_p3 = scmp.eq.s32.totalorder %s421_s16, 1 }
   0xa   : > { %p720_p4 = por %p710_p1, %p86_p0  ;;  %p422_p5 = scmp.ge.s32.totalorder %s655_s14, 1 }
   0xb   : > { %p725_p6 = por %p120_p3, %p86_p0  ;;  %p127_p7 = scmp.lt.s32.totalorder %s655_s14, 3 }
   0xc   : > { %s843_s19 = scalar_select %p720_p4, 1, 0 }
   0xd   : > { %s844_s20 = scalar_select %p725_p6, 1, 0 }
   0xe   : > { %p730_p8 = pnand %p422_p5, %p127_p7  ;;  %s657_s22 = smov [#allocation2]  }
   0xf   : > { %s142_s23 = sshll.u32 %s657_s22, 4  ;;  %s38_s25 = sadd.s32 1, %s651_s13  ;;  %s143_s23 = int_to_ptr.vmem [resolvable:$true] %s142_s23 }
  0x10   : > { %p450_p10 = pneg %p730_p8  ;;  %s73_s26 = sadd.s32 1, %s643_s11 }
  0x11   : > { %p40_p12 = scmp.ge.s32.totalorder %s38_s25, 2  ;;  %s528_s27 = scalar_lea.vmem %s143_s23, 64 }
  0x12   : > { %p739_p11 = pnand %p450_p10, %p710_p1  ;;  %p529_p0 = scmp.ne.s32.totalorder %s143_s23, %s528_s27 }
  0x13   : > { %p536_p7 = scmp.lt.s32.totalorder %s143_s23, %s143_s23  ;;  %p537_p6 = scmp.lt.s32.totalorder %s528_s27, %s528_s27 }
  0x14   : > { %p519_p13 = pneg %p739_p11 }
  0x15   : > { %p538_p9 = por %p537_p6, %p536_p7 }
  0x16   : > { %p531_p3 = pnand %p529_p0, %p519_p13 }
  0x18   : > { %p532_p5 = pneg %p531_p3 }
  0x1a   : > { %p539_p4 = pnand %p538_p9, %p532_p5 }
  0x1c   : > { %542 = shalt.err (!%p539_p4)
}
  0x1d   : > { %453 = dma.hbm_to_vmem [thread:$0]  (!%p739_p11), %s837_s0, 64, %s143_s23, [#allocation3]  }
  0x1e   : > { %s858_s25 = smov (%p40_p12, %s38_s25), 0  ;;  %p80_p6 = scmp.ne.s32.totalorder %s643_s11, %s639_s10 }
  0x1f   : > { %p81_p4 = scmp.eq.s32.totalorder %s655_s14, 0  ;;  %s68_s30 = ssub.s32 %s651_s13, %s858_s25 }
  0x20   : > { %p463_p9 = scmp.lt.s32.totalorder %s655_s14, 2  ;;  %p71_p10 = scmp.eq.s32.totalorder %s68_s30, 0 }
  0x21   : > { %p82_p13 = por %p81_p4, %p80_p6  ;;  %p762_p0 = por %p714_p2, %p80_p6 }
  0x22   : > { %s153_s4 = sand.u32 1, %s643_s11   ;;  %s440_s7 = sshll.u32 %s651_s13, 7 }
  0x23   : > { %s768_s5 = scalar_select %p71_p10, %s643_s11, %s73_s26  }
  0x24   : > { %s425_s6 = sshll.u32 %s153_s4, 3  ;;  %s165_s16 = scalar_lea.hbm %s838_s1, %s440_s7 }
  0x25   : > { %s157_s22 = scalar_lea.vmem [#allocation5], %s425_s6  ;;  %p774_p11 = pnand %p463_p9, %p82_p13 }
  0x26   : > { %s167_s23 = sshll.u32 %s157_s22, 4  ;;  %s154_s18 = scalar_lea.sflag [#allocation6], %s153_s4  ;;  %s168_s23 = int_to_ptr.vmem [resolvable:$true] %s167_s23 }
  0x27   : > { %p545_p2 = pneg %p774_p11  ;;  %s556_s27 = scalar_lea.vmem %s168_s23, 128 }
  0x28   : > { %p557_p12 = scmp.ne.s32.totalorder %s168_s23, %s556_s27  ;;  %s658_s26 = smov [#allocation5]  }
  0x29   : > { %s561_s28 = sshll.u32 %s658_s26, 4  ;;  %s562_s28 = int_to_ptr.vmem [resolvable:$false] %s561_s28 }
  0x2a   : > { %p559_p3 = pnand %p557_p12, %p545_p2  ;;  %s563_s29 = scalar_lea.vmem %s562_s28, 256 }
  0x2b   : > { %p564_p7 = scmp.lt.s32.totalorder %s168_s23, %s562_s28  ;;  %p565_p6 = scmp.lt.s32.totalorder %s563_s29, %s556_s27 }
  0x2c   : > { %p560_p5 = pneg %p559_p3 }
  0x2d   : > { %p566_p4 = por %p565_p6, %p564_p7 }
  0x2f   : > { %p567_p10 = pnand %p566_p4, %p560_p5 }
  0x31   : > { %570 = shalt.err (!%p567_p10)
}
  0x32   : > { %457 = dma.hbm_to_vmem [thread:$0]  (!%p774_p11), %s165_s16, 128, %s168_s23, %s154_s18  }
  0x33   : > { %176 = sbr.rel (%p730_p8) target bundleno = 276 (0x114), region = 28 }
  0x38   : > { %622 = dma.done.wait (%p710_p1), [#allocation3], 64  }
  0x39   : > { %624 = vsyncadd (%p710_p1), [#allocation3], 4294967232  ;;  %s789_s30 = sand.u32 1, %s639_s10   ;;  %p849_p9 = scmp.ne.s32.totalorder %s843_s19, 0 }
  0x3a   : > { %s430_s4 = sshll.u32 %s789_s30, 3  ;;  %s183_s6 = scalar_lea.sflag [#allocation6], %s789_s30 }
  0x3b   : > { %s186_s7 = scalar_lea.vmem [#allocation5], %s430_s4 }
  0x3c   : > { %626 = dma.done.wait (%p849_p9), %s183_s6, 128  }
  0x3d   : > { %628 = vsyncadd (%p849_p9), %s183_s6, 4294967168  ;;  %v659_v0 = vmov 0.0   ;;  %v210_v1 = vld [vmem:[%s186_s7] sm:$0xff]  ;;  %vm217_vm0 = vcmask 1043456   ;;  %v209_v3 = vld [vmem:[#allocation2] sm:$0xf] }
  0x3e   : > { %286 = vmatprep.mubr.f32.mxu0 %v659_v0  ;;  %v212_v2 = vcombine.high %v210_v1, %v210_v1  ;;  %vm213_vm1 = vcmask 31744   ;;  %s441_s17 = sshll.u32 %s647_s12, 7  ;;  %s206_s21 = scalar_lea.vmem [#allocation7], %s430_s4 }
  0x3f   : > { %s317_s8 = sshll.u32 %s206_s21, 4  ;;  %s315_s16 = scalar_lea.hbm %s839_s2, %s441_s17  ;;  %s318_s8 = int_to_ptr.vmem [resolvable:$true] %s317_s8 }
  0x40   : > { %432 = vmatprep.subr.msk.mxu0 %vm217_vm0, %v212_v2  ;;  %s299_s22 = scalar_lea.sflag [#allocation4], %s789_s30  ;;  %s571_s23 = scalar_lea.vmem %s318_s8, 128 }
  0x41   : > { %433 = vmatpush1.msk.msra.mxu0 %vm217_vm0, %v210_v1  ;;  %p572_p1 = scmp.ne.s32.totalorder %s318_s8, %s571_s23  ;;  %s660_s24 = smov [#allocation7]  }
  0x42   : > { %434 = vmatmul.mubr.msk.f32.vlgmr.msra.gmra.mxu0 %vm213_vm1, %v209_v3  ;;  %s575_s18 = sshll.u32 %s660_s24, 4  ;;  %s576_s18 = int_to_ptr.vmem [resolvable:$false] %s575_s18 }
  0x43   : > { %p573_p8 = pnand %p572_p1, %p762_p0  ;;  %s577_s12 = scalar_lea.vmem %s576_s18, 256 }
  0x44   : > { %p578_p11 = scmp.lt.s32.totalorder %s318_s8, %s576_s18  ;;  %p579_p2 = scmp.lt.s32.totalorder %s577_s12, %s571_s23 }
  0x45   : > { %p574_p13 = pneg %p573_p8 }
  0x46   : > { %p580_p12 = por %p579_p2, %p578_p11 }
  0x48   : > { %p581_p3 = pnand %p580_p12, %p574_p13 }
 0x102   : > { %v288_v4 = vpop.f32.mrf.mxu0 }
 0x104   : > { %v290_v5 = vpop.f32.mrf.mxu0 }
 0x105   : > { %v295_v6 = vcombine.low %v288_v4, %v290_v5 }
 0x107   : > { %297 = vst [vmem:[%s206_s21] sm:$0xff] %v295_v6 }
 0x108   : > { %584 = shalt.err (!%p581_p3)
}
 0x109   : > { %s585_s27 = scalar_lea.hbm %s315_s16, 128  ;;  %s589_s29 = scalar_lea.hbm %s839_s2, 256 }
 0x10a   : > { %p586_p5 = scmp.ne.s32.totalorder %s315_s16, %s585_s27  ;;  %p590_p4 = scmp.lt.s32.totalorder %s315_s16, %s839_s2 }
 0x10b   : > { %p591_p10 = scmp.lt.s32.totalorder %s589_s29, %s585_s27 }
 0x10c   : > { %p587_p7 = pnand %p586_p5, %p762_p0 }
 0x10d   : > { %p592_p9 = por %p591_p10, %p590_p4 }
 0x10e   : > { %p588_p6 = pneg %p587_p7 }
 0x110   : > { %p593_p1 = pnand %p592_p9, %p588_p6 }
 0x112   : > { %596 = shalt.err (!%p593_p1)
}
 0x113   : > { %448 = dma.vmem_to_hbm [thread:$0]  (%p762_p0), %s318_s8, 128, %s315_s16, %s299_s22  }
 0x114 PF: > { %s329_s6 = sand.u32 1, %s635_s9   ;;  %p850_p8 = scmp.ne.s32.totalorder %s844_s20, 0 }
 0x115   : > { %p851_p13 = scmp.ge.s32.totalorder %s655_s14, 2  ;;  %s330_s7 = scalar_lea.sflag [#allocation4], %s329_s6 }
 0x117   : > { %p459_p11 = pnand %p851_p13, %p850_p8 }
 0x119   : > { %p460_p2 = pneg %p459_p11 }
 0x11b   : > { %630 = dma.done.wait (%p460_p2), %s330_s7, 128  }
 0x11c   : > { %632 = vsyncadd (%p460_p2), %s330_s7, 4294967168  ;;  %s19_s14 = sadd.s32 1, %s655_s14   ;;  %s852_s9 = smov %s639_s10 }
 0x11d   : > { %p16_p12 = scmp.ge.s32.totalorder %s19_s14, 4   ;;  %s853_s10 = smov %s643_s11 }
 0x11e   : > { %s854_s11 = smov %s768_s5  ;;  %s855_s12 = smov %s651_s13 }
 0x11f   : > { %s856_s13 = smov %s858_s25  ;;  %18 = sbr.rel (!%p16_p12) target bundleno = 7 (0x7), region = 79 }
 0x124   :  { %335 = vsyncpa [#allocation3], 1 }
 0x125   :  { %337 = vsyncpa [#allocation3 + $0x1], 1 }
 0x126   :  { %338 = vsyncpa [#allocation6], 1 }
 0x127   :  { %340 = vsyncpa [#allocation6 + $0x1], 1 }
 0x128   :  { %341 = vsyncpa [#allocation4], 1 }
 0x129   :  { %343 = vsyncpa [#allocation4 + $0x1], 1 }

</bundles_post_ra>
